<compile_context>
chip_gen: v7x
topology: tpu7x:2x2x1
jax: 0.10.0
libtpu: 0.0.40
codegen_flags: <defaults>
</compile_context>

<pallas_src>
import functools

import numpy as np

import jax
import jax.numpy as jnp
from jax.experimental import pallas as pl
from jax.experimental.pallas import tpu as pltpu


# ----------------------------------------------------------------------------- kernel


def _samlp_kernel(num_layers, compute_dtype, *refs):
    """(Linear+bias+ReLU) x (num_layers-1) -> Linear -> log_softmax, all fused."""
    x_ref = refs[0]
    o_ref = refs[-1]
    p = refs[1:-1]                      # [w0, b0, w1, b1, ..., w_out, b_out]

    # f32 -> bf16 cast on the VPU, hidden under the input DMA (x arrives as f32 tiles).
    h = x_ref[...].astype(compute_dtype)
    for li in range(num_layers - 1):
        w = p[2 * li]
        b = p[2 * li + 1]
        # MXU matmul with f32 accumulation; bias/ReLU in f32 (v5e-safe epilogue).
        h = jnp.dot(h, w[...], preferred_element_type=jnp.float32) + b[...]
        h = jnp.maximum(h, 0.0).astype(compute_dtype)
        # dropout: identity at inference.
    w_out, b_out = p[-2], p[-1]
    logits = jnp.dot(h, w_out[...], preferred_element_type=jnp.float32) + b_out[...]

    # numerically stable log_softmax over the last axis (f32)
    m = jnp.max(logits, axis=-1, keepdims=True)
    z = logits - m
    lse = jnp.log(jnp.sum(jnp.exp(z), axis=-1, keepdims=True))
    o_ref[...] = (z - lse).astype(o_ref.dtype)


# --------------------------------------------------------------------------- wrapper


def _round_up(x, m):
    return ((x + m - 1) // m) * m


def prepare_params(params, compute_dtype=jnp.bfloat16):
    """Fold wagg into the first Linear and eval-mode BN into every hidden Linear.

    Returns {"layers": [(W, b), ...]} with W in `compute_dtype`, b in f32.
    """
    wagg = params["wagg"]                               # (1, nagp)
    nagp = wagg.shape[1]
    layers = []
    for li, hp in enumerate(params["hidden"]):
        w, b = hp["w"], hp["b"]
        if li == 0:
            c_in = w.shape[0]
            # W'[c*nagp + a, j] = wagg[0, a] * W[c, j]  (matches x.reshape(N, c_in*nagp))
            w = (w[:, None, :] * wagg[0][None, :, None]).reshape(c_in * nagp, -1)
        scale, shift = hp["scale"], hp["shift"]          # eval-mode BN affine
        w = w * scale                                    # fold BN into the Linear
        b = b * scale + shift
        layers.append((w.astype(compute_dtype), b.astype(jnp.float32)))
    layers.append((params["w_out"].astype(compute_dtype),
                   params["b_out"].astype(jnp.float32)))
    return {"layers": layers, "nagp": nagp}


def samlp_forward(x, prepared, *, block_n=None, out_dtype=jnp.float32):
    """Fused SaMLP forward.  x: (N, in_channels, nagp) float32."""
    N, c_in, nagp = x.shape
    k0 = c_in * nagp
    layers = prepared["layers"]
    out_channels = layers[-1][0].shape[1]
    cdtype = layers[0][0].dtype

    # Flatten the aggregation axis into the feature axis -> lane-dense (N, K0) input.
    # Metadata-only reshape; x stays float32 in HBM (bf16 cast is done in-kernel).
    x_flat = x.reshape(N, k0)

    flat = []
    for w, b in layers:
        flat += [w, b]
    param_bytes = sum(int(a.size) * a.dtype.itemsize for a in flat)

    # ------------------------------- VMEM budgeting -------------------------------
    try:
        vmem_cap = int(pltpu.get_tpu_info().vmem_capacity_bytes)
    except Exception:
        vmem_cap = 64 * 1024 * 1024            # v7x per-TC size = smallest generation
    vmem_budget = min(40 * 1024 * 1024, int(vmem_cap * 0.6))
    hard_cap = min(48 * 1024 * 1024, int(vmem_cap * 0.65))

    lane = 128
    k0_p = _round_up(k0, lane)
    hid_p = _round_up(max(w.shape[1] for w, _ in layers), lane)
    out_p = _round_up(out_channels, lane)
    out_item = np.dtype(out_dtype).itemsize

    def vmem_estimate(bn):
        buf = 2 * bn * k0_p * x_flat.dtype.itemsize        # double-buffered input tiles
        buf += 2 * bn * out_p * out_item                    # double-buffered output tiles
        # body temporaries: bf16 copy of x, f32 + bf16 hidden activations, f32 logit temps
        tmp = bn * (k0_p * 2 + hid_p * (4 + 2) + out_p * 4 * 2)
        return buf + tmp + 2 * param_bytes

    # ------------------------------ batch-tile choice ------------------------------
    if block_n is None:
        block_n = 8192          # big tiles amortize the ~0.35 us per-grid-step overhead
    bn = max(8, _round_up(min(block_n, _round_up(N, 8)), 8))
    while bn > 256 and vmem_estimate(bn) > vmem_budget:
        bn = _round_up(bn // 2, 8)
    # v7x has 2 TensorCores: for non-trivial N make sure there are >= 2 grid steps so
    # dimension_semantics=("parallel",) can shard them.  Harmless on v5e/v6e (1 TC).
    if pl.cdiv(N, bn) < 2 and N >= 2048:
        bn = max(8, _round_up(pl.cdiv(N, 2), 8))
    grid = (pl.cdiv(N, bn),)    # ragged last block; no jnp.pad pass over x

    cp_kwargs = {"dimension_semantics": ("parallel",)}
    est = vmem_estimate(bn)
    if est > 12 * 1024 * 1024:  # above the conservative (v5e) scoped-VMEM default
        cp_kwargs["vmem_limit_bytes"] = int(
            min(max(est * 3 // 2, 16 * 1024 * 1024), hard_cap))

    kernel = functools.partial(_samlp_kernel, len(layers), cdtype)
    out_shape = jax.ShapeDtypeStruct((N, out_channels), out_dtype)
    out_spec = pl.BlockSpec((bn, out_channels), lambda i: (i, 0))

    def build_in_specs(single_buffer_params):
        specs = [pl.BlockSpec((bn, k0), lambda i: (i, 0))]
        for a in flat:
            if single_buffer_params:
                # Constant index_map => resident param; Buffered(1) drops the useless
                # second pipeline buffer (only matters for large hidden widths).
                specs.append(pl.BlockSpec(a.shape, lambda i: (0, 0),
                                          pipeline_mode=pl.Buffered(1)))
            else:
                specs.append(pl.BlockSpec(a.shape, lambda i: (0, 0)))
        return specs

    def run(single_buffer_params):
        return pl.pallas_call(
            kernel,
            out_shape=out_shape,
            grid=grid,
            in_specs=build_in_specs(single_buffer_params),
            out_specs=out_spec,
            compiler_params=pltpu.CompilerParams(**cp_kwargs),
        )(x_flat, *flat)

    try:
        return run(True)
    except Exception:
        # Fallback for jax versions that reject pipeline_mode=pl.Buffered(1).
        return run(False)


# ----------------------------------------------------------------- params / references


def init_params(key, nagp, in_channels, hidden_channels, out_channels, num_layers,
                eps=1e-5):
    """Deterministic synthetic parameters matching SaMLP.__init__ shapes (eval mode)."""
    num_hidden = num_layers - 1
    keys = list(jax.random.split(key, 1 + 6 * num_hidden + 2))

    def nxt():
        return keys.pop(0)

    def lin(fan_in, fan_out):
        bound = float(fan_in) ** -0.5
        w = jax.random.uniform(nxt(), (fan_in, fan_out), jnp.float32, -bound, bound)
        b = jax.random.uniform(nxt(), (1, fan_out), jnp.float32, -bound, bound)
        return w, b

    # self.linear = nn.Linear(nagp, 1, bias=False) -> weight shape (1, nagp)
    bound = float(nagp) ** -0.5
    wagg = jax.random.uniform(nxt(), (1, nagp), jnp.float32, -bound, bound)

    hidden = []
    dims_in = [in_channels] + [hidden_channels] * (num_hidden - 1)
    for li in range(num_hidden):
        w, b = lin(dims_in[li], hidden_channels)
        gamma = 1.0 + 0.1 * jax.random.normal(nxt(), (1, hidden_channels), jnp.float32)
        beta = 0.1 * jax.random.normal(nxt(), (1, hidden_channels), jnp.float32)
        rmean = 0.1 * jax.random.normal(nxt(), (1, hidden_channels), jnp.float32)
        rvar = 1.0 + 0.1 * jax.random.uniform(nxt(), (1, hidden_channels), jnp.float32)
        scale = gamma / jnp.sqrt(rvar + eps)
        shift = beta - rmean * scale
        hidden.append({"w": w, "b": b, "scale": scale, "shift": shift})

    w_out, b_out = lin(hidden_channels, out_channels)
    return {"wagg": wagg, "hidden": hidden, "w_out": w_out, "b_out": b_out}


def samlp_reference(x, params):
    """Pure-JAX f32 reference of the original PyTorch forward (eval mode)."""
    h = jnp.sum(x * params["wagg"][None, :, :], axis=-1)
    for hp in params["hidden"]:
        h = h @ hp["w"] + hp["b"]
        h = h * hp["scale"] + hp["shift"]
        h = jnp.maximum(h, 0.0)
    logits = h @ params["w_out"] + params["b_out"]
    return jax.nn.log_softmax(logits, axis=-1)


def samlp_reference_prepared(x, prepared):
    """Reference mirroring the kernel math on the folded / dtype-cast params."""
    layers = prepared["layers"]
    cdtype = layers[0][0].dtype
    h = x.reshape(x.shape[0], -1).astype(cdtype)
    for w, b in layers[:-1]:
        h = jnp.dot(h, w, preferred_element_type=jnp.float32) + b
        h = jnp.maximum(h, 0.0).astype(cdtype)
    w, b = layers[-1]
    logits = jnp.dot(h, w, preferred_element_type=jnp.float32) + b
    return jax.nn.log_softmax(logits, axis=-1)


# -------------------------------------------------------------------------------- main


if __name__ == "__main__":
    # Small, module-consistent shapes.
    N = 64                 # batch (nodes)
    nagp = 8               # aggregation width reduced by nn.Linear(nagp, 1)
    in_channels = 16       # -> flattened K0 = 128 (full lane width)
    hidden_channels = 32
    out_channels = 8
    num_layers = 3         # lins: in->hid, hid->hid, hid->out ; bns: 2

    key = jax.random.PRNGKey(0)
    kx, kp = jax.random.split(key)
    x = jax.random.normal(kx, (N, in_channels, nagp), jnp.float32)
    params = init_params(kp, nagp, in_channels, hidden_channels, out_channels, num_layers)
    prepared = prepare_params(params, compute_dtype=jnp.bfloat16)

    out = samlp_forward(x, prepared)
    out = jax.block_until_ready(out)
    assert out.shape == (N, out_channels)
    assert bool(jnp.all(jnp.isfinite(out)))

    # Tight check: same folded bf16 params, f32 accumulation (matches kernel math).
    ref_tight = samlp_reference_prepared(x, prepared)
    err_tight = float(jnp.max(jnp.abs(out - ref_tight)))
    assert jnp.allclose(out, ref_tight, atol=2e-3, rtol=2e-3), err_tight

    # Semantic check: original f32 math of the PyTorch module (bf16-sized tolerance).
    ref_true = samlp_reference(x, params)
    err_true = float(jnp.max(jnp.abs(out - ref_true)))
    assert jnp.allclose(out, ref_true, atol=5e-2, rtol=5e-2), err_true

    print("KERNEL_OK")
</pallas_src>

<mosaic_0001>
module attributes {stable_mosaic.version = 11 : i64} {
  func.func @_samlp_kernel(%arg0: i32, %arg1: memref<64x128xf32, #tpu.memory_space<vmem>>, %arg2: memref<128x32xbf16, #tpu.memory_space<vmem>>, %arg3: memref<1x32xf32, #tpu.memory_space<vmem>>, %arg4: memref<32x32xbf16, #tpu.memory_space<vmem>>, %arg5: memref<1x32xf32, #tpu.memory_space<vmem>>, %arg6: memref<32x8xbf16, #tpu.memory_space<vmem>>, %arg7: memref<1x8xf32, #tpu.memory_space<vmem>>, %arg8: memref<64x8xf32, #tpu.memory_space<vmem>>) attributes {dimension_semantics = [#tpu.dimension_semantics<parallel>], iteration_bounds = array<i64: 1>, scalar_prefetch = 0 : i64, scratch_operands = 0 : i64, tpu.core_type = #tpu.core_type<tc>, window_params = [{transform_indices = @transform_0, window_bounds = array<i64: 64, 128>}, {pipeline_mode = #tpu.pipeline_mode<synchronous>, transform_indices = @transform_1, window_bounds = array<i64: 128, 32>}, {pipeline_mode = #tpu.pipeline_mode<synchronous>, transform_indices = @transform_2, window_bounds = array<i64: 1, 32>}, {pipeline_mode = #tpu.pipeline_mode<synchronous>, transform_indices = @transform_3, window_bounds = array<i64: 32, 32>}, {pipeline_mode = #tpu.pipeline_mode<synchronous>, transform_indices = @transform_4, window_bounds = array<i64: 1, 32>}, {pipeline_mode = #tpu.pipeline_mode<synchronous>, transform_indices = @transform_5, window_bounds = array<i64: 32, 8>}, {pipeline_mode = #tpu.pipeline_mode<synchronous>, transform_indices = @transform_6, window_bounds = array<i64: 1, 8>}, {transform_indices = @transform_7, window_bounds = array<i64: 64, 8>}]} {
    %c0 = arith.constant 0 : index
    %c0_0 = arith.constant 0 : index
    %0 = vector.load %arg1[%c0, %c0_0] : memref<64x128xf32, #tpu.memory_space<vmem>>, vector<64x128xf32>
    %1 = arith.truncf %0 : vector<64x128xf32> to vector<64x128xbf16>
    %c0_1 = arith.constant 0 : index
    %c0_2 = arith.constant 0 : index
    %2 = vector.load %arg2[%c0_1, %c0_2] : memref<128x32xbf16, #tpu.memory_space<vmem>>, vector<128x32xbf16>
    %cst = arith.constant dense<0.000000e+00> : vector<64x32xf32>
    %3 = tpu.matmul %1, %2, %cst {dimension_numbers = #tpu.dot_dimension_numbers<[1], [0], [0], [1], [0, 0, 1, 1], [], []>} : vector<64x128xbf16>, vector<128x32xbf16>, vector<64x32xf32> -> vector<64x32xf32>
    %c0_3 = arith.constant 0 : index
    %c0_4 = arith.constant 0 : index
    %4 = vector.load %arg3[%c0_3, %c0_4] : memref<1x32xf32, #tpu.memory_space<vmem>>, vector<1x32xf32>
    %5 = vector.broadcast %4 : vector<1x32xf32> to vector<64x32xf32>
    %6 = arith.addf %3, %5 : vector<64x32xf32>
    %cst_5 = arith.constant 0.000000e+00 : f32
    %7 = vector.broadcast %cst_5 : f32 to vector<64x32xf32>
    %8 = arith.maximumf %6, %7 : vector<64x32xf32>
    %9 = arith.truncf %8 : vector<64x32xf32> to vector<64x32xbf16>
    %c0_6 = arith.constant 0 : index
    %c0_7 = arith.constant 0 : index
    %10 = vector.load %arg4[%c0_6, %c0_7] : memref<32x32xbf16, #tpu.memory_space<vmem>>, vector<32x32xbf16>
    %cst_8 = arith.constant dense<0.000000e+00> : vector<64x32xf32>
    %11 = tpu.matmul %9, %10, %cst_8 {dimension_numbers = #tpu.dot_dimension_numbers<[1], [0], [0], [1], [0, 0, 1, 1], [], []>} : vector<64x32xbf16>, vector<32x32xbf16>, vector<64x32xf32> -> vector<64x32xf32>
    %c0_9 = arith.constant 0 : index
    %c0_10 = arith.constant 0 : index
    %12 = vector.load %arg5[%c0_9, %c0_10] : memref<1x32xf32, #tpu.memory_space<vmem>>, vector<1x32xf32>
    %13 = vector.broadcast %12 : vector<1x32xf32> to vector<64x32xf32>
    %14 = arith.addf %11, %13 : vector<64x32xf32>
    %cst_11 = arith.constant 0.000000e+00 : f32
    %15 = vector.broadcast %cst_11 : f32 to vector<64x32xf32>
    %16 = arith.maximumf %14, %15 : vector<64x32xf32>
    %17 = arith.truncf %16 : vector<64x32xf32> to vector<64x32xbf16>
    %c0_12 = arith.constant 0 : index
    %c0_13 = arith.constant 0 : index
    %18 = vector.load %arg6[%c0_12, %c0_13] : memref<32x8xbf16, #tpu.memory_space<vmem>>, vector<32x8xbf16>
    %cst_14 = arith.constant dense<0.000000e+00> : vector<64x8xf32>
    %19 = tpu.matmul %17, %18, %cst_14 {dimension_numbers = #tpu.dot_dimension_numbers<[1], [0], [0], [1], [0, 0, 1, 1], [], []>} : vector<64x32xbf16>, vector<32x8xbf16>, vector<64x8xf32> -> vector<64x8xf32>
    %c0_15 = arith.constant 0 : index
    %c0_16 = arith.constant 0 : index
    %20 = vector.load %arg7[%c0_15, %c0_16] : memref<1x8xf32, #tpu.memory_space<vmem>>, vector<1x8xf32>
    %21 = vector.broadcast %20 : vector<1x8xf32> to vector<64x8xf32>
    %22 = arith.addf %19, %21 : vector<64x8xf32>
    %cst_17 = arith.constant dense<0xFF800000> : vector<64xf32>
    %23 = vector.multi_reduction <maximumf>, %22, %cst_17 [1] : vector<64x8xf32> to vector<64xf32>
    %24 = vector.shape_cast %23 : vector<64xf32> to vector<64x1xf32>
    %25 = vector.broadcast %24 : vector<64x1xf32> to vector<64x8xf32>
    %26 = arith.subf %22, %25 : vector<64x8xf32>
    %27 = math.exp %26 : vector<64x8xf32>
    %cst_18 = arith.constant dense<0.000000e+00> : vector<64xf32>
    %28 = vector.multi_reduction <add>, %27, %cst_18 [1] : vector<64x8xf32> to vector<64xf32>
    %29 = vector.shape_cast %28 : vector<64xf32> to vector<64x1xf32>
    %30 = math.log %29 : vector<64x1xf32>
    %31 = vector.broadcast %30 : vector<64x1xf32> to vector<64x8xf32>
    %32 = arith.subf %26, %31 : vector<64x8xf32>
    %c0_19 = arith.constant 0 : index
    %c0_20 = arith.constant 0 : index
    %33 = vector.load %arg8[%c0_19, %c0_20] : memref<64x8xf32, #tpu.memory_space<vmem>>, vector<64x8xf32>
    tpu.vector_store %arg8[%c0_19, %c0_20], %32 {strides = array<i32>} : memref<64x8xf32, #tpu.memory_space<vmem>>, vector<64x8xf32>,
    return
  }
  func.func @transform_0(%arg0: i32) -> (i32, i32) {
    %c0_i32 = arith.constant 0 : i32
    %c0_i32_0 = arith.constant 0 : i32
    return %arg0, %c0_i32 : i32, i32
  }
  func.func @transform_1(%arg0: i32) -> (i32, i32) {
    %c0_i32 = arith.constant 0 : i32
    %c0_i32_0 = arith.constant 0 : i32
    %c0_i32_1 = arith.constant 0 : i32
    return %c0_i32, %c0_i32_0 : i32, i32
  }
  func.func @transform_2(%arg0: i32) -> (i32, i32) {
    %c0_i32 = arith.constant 0 : i32
    %c0_i32_0 = arith.constant 0 : i32
    %c0_i32_1 = arith.constant 0 : i32
    return %c0_i32, %c0_i32_0 : i32, i32
  }
  func.func @transform_3(%arg0: i32) -> (i32, i32) {
    %c0_i32 = arith.constant 0 : i32
    %c0_i32_0 = arith.constant 0 : i32
    %c0_i32_1 = arith.constant 0 : i32
    return %c0_i32, %c0_i32_0 : i32, i32
  }
  func.func @transform_4(%arg0: i32) -> (i32, i32) {
    %c0_i32 = arith.constant 0 : i32
    %c0_i32_0 = arith.constant 0 : i32
    %c0_i32_1 = arith.constant 0 : i32
    return %c0_i32, %c0_i32_0 : i32, i32
  }
  func.func @transform_5(%arg0: i32) -> (i32, i32) {
    %c0_i32 = arith.constant 0 : i32
    %c0_i32_0 = arith.constant 0 : i32
    %c0_i32_1 = arith.constant 0 : i32
    return %c0_i32, %c0_i32_0 : i32, i32
  }
  func.func @transform_6(%arg0: i32) -> (i32, i32) {
    %c0_i32 = arith.constant 0 : i32
    %c0_i32_0 = arith.constant 0 : i32
    %c0_i32_1 = arith.constant 0 : i32
    return %c0_i32, %c0_i32_0 : i32, i32
  }
  func.func @transform_7(%arg0: i32) -> (i32, i32) {
    %c0_i32 = arith.constant 0 : i32
    %c0_i32_0 = arith.constant 0 : i32
    return %arg0, %c0_i32 : i32, i32
  }
}

module attributes {stable_mosaic.version = 11 : i64} {
  func.func @_samlp_kernel(%arg0: i32, %arg1: memref<64x128xf32, #tpu.memory_space<vmem>>, %arg2: memref<128x32xbf16, #tpu.memory_space<vmem>>, %arg3: memref<1x32xf32, #tpu.memory_space<vmem>>, %arg4: memref<32x32xbf16, #tpu.memory_space<vmem>>, %arg5: memref<1x32xf32, #tpu.memory_space<vmem>>, %arg6: memref<32x8xbf16, #tpu.memory_space<vmem>>, %arg7: memref<1x8xf32, #tpu.memory_space<vmem>>, %arg8: memref<64x8xf32, #tpu.memory_space<vmem>>) attributes {dimension_semantics = [#tpu.dimension_semantics<parallel>], iteration_bounds = array<i64: 1>, scalar_prefetch = 0 : i64, scratch_operands = 0 : i64, tpu.core_type = #tpu.core_type<tc>, window_params = [{transform_indices = @transform_0, window_bounds = array<i64: 64, 128>}, {pipeline_mode = #tpu.pipeline_mode<synchronous>, transform_indices = @transform_1, window_bounds = array<i64: 128, 32>}, {pipeline_mode = #tpu.pipeline_mode<synchronous>, transform_indices = @transform_2, window_bounds = array<i64: 1, 32>}, {pipeline_mode = #tpu.pipeline_mode<synchronous>, transform_indices = @transform_3, window_bounds = array<i64: 32, 32>}, {pipeline_mode = #tpu.pipeline_mode<synchronous>, transform_indices = @transform_4, window_bounds = array<i64: 1, 32>}, {pipeline_mode = #tpu.pipeline_mode<synchronous>, transform_indices = @transform_5, window_bounds = array<i64: 32, 8>}, {pipeline_mode = #tpu.pipeline_mode<synchronous>, transform_indices = @transform_6, window_bounds = array<i64: 1, 8>}, {transform_indices = @transform_7, window_bounds = array<i64: 64, 8>}]} {
    %c0 = arith.constant 0 : index
    %c0_0 = arith.constant 0 : index
    %0 = vector.load %arg1[%c0, %c0_0] : memref<64x128xf32, #tpu.memory_space<vmem>>, vector<64x128xf32>
    %1 = arith.truncf %0 : vector<64x128xf32> to vector<64x128xbf16>
    %c0_1 = arith.constant 0 : index
    %c0_2 = arith.constant 0 : index
    %2 = vector.load %arg2[%c0_1, %c0_2] : memref<128x32xbf16, #tpu.memory_space<vmem>>, vector<128x32xbf16>
    %cst = arith.constant dense<0.000000e+00> : vector<64x32xf32>
    %3 = tpu.matmul %1, %2, %cst {dimension_numbers = #tpu.dot_dimension_numbers<[1], [0], [0], [1], [0, 0, 1, 1], [], []>} : vector<64x128xbf16>, vector<128x32xbf16>, vector<64x32xf32> -> vector<64x32xf32>
    %c0_3 = arith.constant 0 : index
    %c0_4 = arith.constant 0 : index
    %4 = vector.load %arg3[%c0_3, %c0_4] : memref<1x32xf32, #tpu.memory_space<vmem>>, vector<1x32xf32>
    %5 = vector.broadcast %4 : vector<1x32xf32> to vector<64x32xf32>
    %6 = arith.addf %3, %5 : vector<64x32xf32>
    %cst_5 = arith.constant 0.000000e+00 : f32
    %7 = vector.broadcast %cst_5 : f32 to vector<64x32xf32>
    %8 = arith.maximumf %6, %7 : vector<64x32xf32>
    %9 = arith.truncf %8 : vector<64x32xf32> to vector<64x32xbf16>
    %c0_6 = arith.constant 0 : index
    %c0_7 = arith.constant 0 : index
    %10 = vector.load %arg4[%c0_6, %c0_7] : memref<32x32xbf16, #tpu.memory_space<vmem>>, vector<32x32xbf16>
    %cst_8 = arith.constant dense<0.000000e+00> : vector<64x32xf32>
    %11 = tpu.matmul %9, %10, %cst_8 {dimension_numbers = #tpu.dot_dimension_numbers<[1], [0], [0], [1], [0, 0, 1, 1], [], []>} : vector<64x32xbf16>, vector<32x32xbf16>, vector<64x32xf32> -> vector<64x32xf32>
    %c0_9 = arith.constant 0 : index
    %c0_10 = arith.constant 0 : index
    %12 = vector.load %arg5[%c0_9, %c0_10] : memref<1x32xf32, #tpu.memory_space<vmem>>, vector<1x32xf32>
    %13 = vector.broadcast %12 : vector<1x32xf32> to vector<64x32xf32>
    %14 = arith.addf %11, %13 : vector<64x32xf32>
    %cst_11 = arith.constant 0.000000e+00 : f32
    %15 = vector.broadcast %cst_11 : f32 to vector<64x32xf32>
    %16 = arith.maximumf %14, %15 : vector<64x32xf32>
    %17 = arith.truncf %16 : vector<64x32xf32> to vector<64x32xbf16>
    %c0_12 = arith.constant 0 : index
    %c0_13 = arith.constant 0 : index
    %18 = vector.load %arg6[%c0_12, %c0_13] : memref<32x8xbf16, #tpu.memory_space<vmem>>, vector<32x8xbf16>
    %cst_14 = arith.constant dense<0.000000e+00> : vector<64x8xf32>
    %19 = tpu.matmul %17, %18, %cst_14 {dimension_numbers = #tpu.dot_dimension_numbers<[1], [0], [0], [1], [0, 0, 1, 1], [], []>} : vector<64x32xbf16>, vector<32x8xbf16>, vector<64x8xf32> -> vector<64x8xf32>
    %c0_15 = arith.constant 0 : index
    %c0_16 = arith.constant 0 : index
    %20 = vector.load %arg7[%c0_15, %c0_16] : memref<1x8xf32, #tpu.memory_space<vmem>>, vector<1x8xf32>
    %21 = vector.broadcast %20 : vector<1x8xf32> to vector<64x8xf32>
    %22 = arith.addf %19, %21 : vector<64x8xf32>
    %cst_17 = arith.constant dense<0xFF800000> : vector<64xf32>
    %23 = vector.multi_reduction <maximumf>, %22, %cst_17 [1] : vector<64x8xf32> to vector<64xf32>
    %24 = vector.shape_cast %23 : vector<64xf32> to vector<64x1xf32>
    %25 = vector.broadcast %24 : vector<64x1xf32> to vector<64x8xf32>
    %26 = arith.subf %22, %25 : vector<64x8xf32>
    %27 = math.exp %26 : vector<64x8xf32>
    %cst_18 = arith.constant dense<0.000000e+00> : vector<64xf32>
    %28 = vector.multi_reduction <add>, %27, %cst_18 [1] : vector<64x8xf32> to vector<64xf32>
    %29 = vector.shape_cast %28 : vector<64xf32> to vector<64x1xf32>
    %30 = math.log %29 : vector<64x1xf32>
    %31 = vector.broadcast %30 : vector<64x1xf32> to vector<64x8xf32>
    %32 = arith.subf %26, %31 : vector<64x8xf32>
    %c0_19 = arith.constant 0 : index
    %c0_20 = arith.constant 0 : index
    %33 = vector.load %arg8[%c0_19, %c0_20] : memref<64x8xf32, #tpu.memory_space<vmem>>, vector<64x8xf32>
    tpu.vector_store %arg8[%c0_19, %c0_20], %32 {strides = array<i32>} : memref<64x8xf32, #tpu.memory_space<vmem>>, vector<64x8xf32>,
    return
  }
  func.func @transform_0(%arg0: i32) -> (i32, i32) {
    %c0_i32 = arith.constant 0 : i32
    %c0_i32_0 = arith.constant 0 : i32
    return %arg0, %c0_i32 : i32, i32
  }
  func.func @transform_1(%arg0: i32) -> (i32, i32) {
    %c0_i32 = arith.constant 0 : i32
    %c0_i32_0 = arith.constant 0 : i32
    %c0_i32_1 = arith.constant 0 : i32
    return %c0_i32, %c0_i32_0 : i32, i32
  }
  func.func @transform_2(%arg0: i32) -> (i32, i32) {
    %c0_i32 = arith.constant 0 : i32
    %c0_i32_0 = arith.constant 0 : i32
    %c0_i32_1 = arith.constant 0 : i32
    return %c0_i32, %c0_i32_0 : i32, i32
  }
  func.func @transform_3(%arg0: i32) -> (i32, i32) {
    %c0_i32 = arith.constant 0 : i32
    %c0_i32_0 = arith.constant 0 : i32
    %c0_i32_1 = arith.constant 0 : i32
    return %c0_i32, %c0_i32_0 : i32, i32
  }
  func.func @transform_4(%arg0: i32) -> (i32, i32) {
    %c0_i32 = arith.constant 0 : i32
    %c0_i32_0 = arith.constant 0 : i32
    %c0_i32_1 = arith.constant 0 : i32
    return %c0_i32, %c0_i32_0 : i32, i32
  }
  func.func @transform_5(%arg0: i32) -> (i32, i32) {
    %c0_i32 = arith.constant 0 : i32
    %c0_i32_0 = arith.constant 0 : i32
    %c0_i32_1 = arith.constant 0 : i32
    return %c0_i32, %c0_i32_0 : i32, i32
  }
  func.func @transform_6(%arg0: i32) -> (i32, i32) {
    %c0_i32 = arith.constant 0 : i32
    %c0_i32_0 = arith.constant 0 : i32
    %c0_i32_1 = arith.constant 0 : i32
    return %c0_i32, %c0_i32_0 : i32, i32
  }
  func.func @transform_7(%arg0: i32) -> (i32, i32) {
    %c0_i32 = arith.constant 0 : i32
    %c0_i32_0 = arith.constant 0 : i32
    return %arg0, %c0_i32 : i32, i32
  }
}

</mosaic_0001>

<bundles_post_ra>
// kernel: tpu_custom_call.1
= control target key start
LH: loop header
LB: loop body
LE: loop exit
PB: predicated region body
PF: predicated region fallthrough
CT: control target
= control target key end

     0   :  { %vm210_vm0 = vcmask 261120   ;;  %vm400_vm1 = vcmask 64512   ;;  %s845_s1 = inlined_call_operand.vmem [shape: bf16[128,32], index: 1, kind: input, shape index: {}]   ;;  %s846_s0 = inlined_call_operand.vmem [shape: f32[64,128], index: 0, kind: input, shape index: {}]   ;;  %s847_s3 = inlined_call_operand.vmem [shape: bf16[32,32], index: 3, kind: input, shape index: {}]   ;;  %s848_s5 = inlined_call_operand.vmem [shape: bf16[32,8], index: 5, kind: input, shape index: {}]   ;;  %s849_s2 = inlined_call_operand.vmem [shape: f32[1,32], index: 2, kind: input, shape index: {}]   ;;  %s850_s4 = inlined_call_operand.vmem [shape: f32[1,32], index: 4, kind: input, shape index: {}]   ;;  %s851_s6 = inlined_call_operand.vmem [shape: f32[1,8], index: 6, kind: input, shape index: {}]   ;;  %s852_s7 = inlined_call_operand.vmem [shape: f32[64,8], index: 7, kind: output, shape index: {}]  }
   0x1   :  { %v604_v0 = vld [vmem:[%s845_s1] sm:$0xff]   ;;  %v605_v1 = vld [vmem:[%s845_s1 + $0x8] sm:$0xff]   ;;  %v606_v2 = vld [vmem:[%s845_s1 + $0x10] sm:$0xff]  }
   0x2   :  { %556 = vmatprep.subr.bf16.mxu0 %v604_v0  ;;  %v607_v3 = vld [vmem:[%s845_s1 + $0x18] sm:$0xff]   ;;  %v27_v4 = vld [vmem:[%s846_s0] sm:$0xff]  ;;  %v28_v5 = vld [vmem:[%s846_s0 + $0x8] sm:$0xff] }
   0x3   :  { %557 = vmatpush3.bf16.msra.mxu0 %v604_v0  ;;  %v35_v6 = vpack.c.bf16 %v28_v5, %v27_v4  ;;  %v608_v7 = vld [vmem:[%s845_s1 + $0x20] sm:$0xff]   ;;  %v609_v8 = vld [vmem:[%s845_s1 + $0x28] sm:$0xff]   ;;  %v610_v9 = vld [vmem:[%s845_s1 + $0x30] sm:$0xff]  }
   0x4   :  { %558 = vmatprep.subr.bf16.mxu0 %v605_v1  ;;  %v611_v10 = vld [vmem:[%s845_s1 + $0x38] sm:$0xff]   ;;  %v29_v11 = vld [vmem:[%s846_s0 + $0x10] sm:$0xff]  ;;  %v31_v13 = vld [vmem:[%s846_s0 + $0x20] sm:$0xff] }
   0x5   :  { %572 = vmatprep.mubr.bf16.mxu0 %v35_v6  ;;  %v30_v12 = vld [vmem:[%s846_s0 + $0x18] sm:$0xff]  ;;  %v32_v14 = vld [vmem:[%s846_s0 + $0x28] sm:$0xff]  ;;  %v33_v17 = vld [vmem:[%s846_s0 + $0x30] sm:$0xff] }
   0x6   :  { %v36_v15 = vpack.c.bf16 %v30_v12, %v29_v11  ;;  %v37_v16 = vpack.c.bf16 %v32_v14, %v31_v13  ;;  %v34_v18 = vld [vmem:[%s846_s0 + $0x38] sm:$0xff]  ;;  %v612_v20 = vld [vmem:[%s847_s3] sm:$0xff]   ;;  %v613_v21 = vld [vmem:[%s847_s3 + $0x8] sm:$0xff]  }
   0x7   :  { %559 = vmatpush3.bf16.msra.mxu0 %v605_v1  ;;  %v38_v19 = vpack.c.bf16 %v34_v18, %v33_v17  ;;  %580 = vmatprep.subr.bf16.mxu1 %v612_v20  ;;  %v614_v22 = vld [vmem:[%s848_s5] sm:$0xff]   ;;  %v615_v52 = vld [vmem:[%s848_s5 + $0x8] sm:$0xff]  }
   0x8   :  { %560 = vmatprep.subr.bf16.mxu0 %v606_v2  ;;  %581 = vmatpush3.bf16.msra.mxu1 %v612_v20  ;;  %v509_v23 = vld [vmem:[%s849_s2] ss:$0 sm:$0xff] }
   0x9   :  { %582 = vmatprep.subr.bf16.mxu1 %v613_v21  ;;  %v518_v53 = vld [vmem:[%s850_s4] ss:$0 sm:$0xff] }
   0xa   :  { %v525_v18 = vld [vmem:[%s851_s6] ss:$0 sm:$0xff] }
   0xb   :  { %561 = vmatpush3.bf16.msra.mxu0 %v606_v2 }
   0xc   :  { %562 = vmatprep.subr.bf16.mxu0 %v607_v3  ;;  %583 = vmatpush3.bf16.msra.mxu1 %v613_v21 }
   0xd   :  { %592 = vmatprep.subr.bf16.mxu1 %v614_v22 }
   0xf   :  { %563 = vmatpush3.bf16.msra.mxu0 %v607_v3 }
  0x10   :  { %564 = vmatprep.subr.bf16.mxu0 %v608_v7 }
  0x13   :  { %565 = vmatpush3.bf16.msra.mxu0 %v608_v7 }
  0x14   :  { %566 = vmatprep.subr.bf16.mxu0 %v609_v8 }
  0x17   :  { %567 = vmatpush3.bf16.msra.mxu0 %v609_v8 }
  0x18   :  { %568 = vmatprep.subr.bf16.mxu0 %v610_v9 }
  0x1b   :  { %569 = vmatpush3.bf16.msra.mxu0 %v610_v9 }
  0x1c   :  { %570 = vmatprep.subr.bf16.mxu0 %v611_v10 }
  0x1f   :  { %571 = vmatpush3.bf16.msra.mxu0 %v611_v10 }
  0x22   :  { %573 = vmatmul.mubr.bf16.vlgmr.msra.gmra.mrb[0].mxu0 %v36_v15 }
  0x23   :  { %576 = vmatprep.mubr.bf16.mxu0 %v37_v16 }
  0x2a   :  { %577 = vmatmul.mubr.bf16.gmra.mrb[4].mxu0 %v38_v19 }
  0xf5   :  { %v574_v24 = vpop.f32.mrb[0].mxu0 }
  0xf6   :  { %v153_v25 = vadd.f32 %v574_v24, %v509_v23  ;;  %v144_v26 = vpop.f32.mrb[1].mxu0 }
  0xf7   :  { %v145_v27 = vadd.f32 %v509_v23, %v144_v26  ;;  %v575_v28 = vpop.f32.mrb[2].mxu0 }
  0xf8   :  { %v156_v29 = vadd.f32 %v575_v28, %v509_v23  ;;  %v147_v30 = vpop.f32.mrb[3].mxu0  ;;  %v177_v32 = vmax.f32 %v153_v25, 0.0 }
  0xf9   :  { %v148_v31 = vadd.f32 %v509_v23, %v147_v30  ;;  %v175_v34 = vmax.f32 %v145_v27, 0.0 }
  0xfa   :  { %v178_v33 = vmax.f32 %v156_v29, 0.0 }
  0xfb   :  { %v176_v35 = vmax.f32 %v148_v31, 0.0 }
  0xfc   :  { %v184_v36 = vpack.c.bf16 %v178_v33, %v177_v32 }
  0xfd   :  { %v578_v37 = vpop.f32.mrb[4].mxu0  ;;  %v183_v38 = vpack.c.bf16 %v176_v35, %v175_v34 }
  0xfe   :  { %v169_v39 = vadd.f32 %v578_v37, %v509_v23  ;;  %v160_v40 = vpop.f32.mrb[5].mxu0 }
  0xff   :  { %v161_v41 = vadd.f32 %v509_v23, %v160_v40  ;;  %v579_v42 = vpop.f32.mrb[6].mxu0  ;;  %584 = vmatprep.mubr.msk.bf16.mxu1 %vm210_vm0, %v183_v38 }
 0x100   :  { %v181_v43 = vmax.f32 %v169_v39, 0.0  ;;  %v172_v44 = vadd.f32 %v579_v42, %v509_v23  ;;  %v163_v45 = vpop.f32.mrb[7].mxu0  ;;  %585 = vmatmul.mubr.msk.bf16.vlgmr.msra.gmra.mrb[0].mxu1 %vm210_vm0, %v184_v36 }
 0x101   :  { %v164_v46 = vadd.f32 %v509_v23, %v163_v45  ;;  %593 = vmatpush3.bf16.msra.mxu1 %v614_v22  ;;  %v179_v48 = vmax.f32 %v161_v41, 0.0 }
 0x102   :  { %v182_v47 = vmax.f32 %v172_v44, 0.0  ;;  %594 = vmatprep.subr.bf16.mxu1 %v615_v52 }
 0x103   :  { %v180_v49 = vmax.f32 %v164_v46, 0.0 }
 0x104   :  { %v186_v50 = vpack.c.bf16 %v182_v47, %v181_v43 }
 0x105   :  { %v185_v51 = vpack.c.bf16 %v180_v49, %v179_v48  ;;  %595 = vmatpush3.bf16.msra.mxu1 %v615_v52 }
 0x107   :  { %588 = vmatprep.mubr.msk.bf16.mxu1 %vm210_vm0, %v185_v51 }
 0x108   :  { %589 = vmatmul.mubr.msk.bf16.gmra.mrb[4].mxu1 %vm210_vm0, %v186_v50 }
 0x1d3   :  { %v586_v54 = vpop.f32.mrb[0].mxu1 }
 0x1d4   :  { %v266_v55 = vadd.f32 %v586_v54, %v518_v53  ;;  %v257_v56 = vpop.f32.mrb[1].mxu1 }
 0x1d5   :  { %v258_v57 = vadd.f32 %v518_v53, %v257_v56  ;;  %v587_v58 = vpop.f32.mrb[2].mxu1 }
 0x1d6   :  { %v269_v59 = vadd.f32 %v587_v58, %v518_v53  ;;  %v260_v60 = vpop.f32.mrb[3].mxu1  ;;  %v290_v62 = vmax.f32 %v266_v55, 0.0 }
 0x1d7   :  { %v261_v61 = vadd.f32 %v518_v53, %v260_v60  ;;  %v288_v0 = vmax.f32 %v258_v57, 0.0 }
 0x1d8   :  { %v291_v63 = vmax.f32 %v269_v59, 0.0 }
 0x1d9   :  { %v289_v1 = vmax.f32 %v261_v61, 0.0 }
 0x1da   :  { %v297_v2 = vpack.c.bf16 %v291_v63, %v290_v62 }
 0x1db   :  { %v296_v3 = vpack.c.bf16 %v289_v1, %v288_v0  ;;  %v590_v4 = vpop.f32.mrb[4].mxu1 }
 0x1dc   :  { %v282_v5 = vadd.f32 %v590_v4, %v518_v53  ;;  %v273_v6 = vpop.f32.mrb[5].mxu1 }
 0x1dd   :  { %v274_v7 = vadd.f32 %v518_v53, %v273_v6  ;;  %v591_v8 = vpop.f32.mrb[6].mxu1  ;;  %596 = vmatprep.mubr.msk.bf16.mxu1 %vm210_vm0, %v296_v3 }
 0x1de   :  { %v285_v9 = vadd.f32 %v591_v8, %v518_v53  ;;  %v276_v10 = vpop.f32.mrb[7].mxu1  ;;  %597 = vmatmul.mubr.msk.bf16.vlgmr.msra.gmra.mrb[8].mxu1 %vm210_vm0, %v297_v2  ;;  %v294_v12 = vmax.f32 %v282_v5, 0.0 }
 0x1df   :  { %v277_v11 = vadd.f32 %v518_v53, %v276_v10  ;;  %v292_v14 = vmax.f32 %v274_v7, 0.0 }
 0x1e0   :  { %v295_v13 = vmax.f32 %v285_v9, 0.0 }
 0x1e1   :  { %v293_v15 = vmax.f32 %v277_v11, 0.0 }
 0x1e2   :  { %v299_v16 = vpack.c.bf16 %v295_v13, %v294_v12 }
 0x1e3   :  { %v298_v17 = vpack.c.bf16 %v293_v15, %v292_v14 }
 0x1e5   :  { %600 = vmatprep.mubr.msk.bf16.mxu1 %vm210_vm0, %v298_v17 }
 0x1e6   :  { %601 = vmatmul.mubr.msk.bf16.gmra.mrb[12].mxu1 %vm210_vm0, %v299_v16 }
 0x2b1   :  { %v598_v19 = vpop.f32.mrb[8].mxu1 }
 0x2b2   :  { %v378_v20 = vadd.f32 %v598_v19, %v525_v18  ;;  %v369_v21 = vpop.f32.mrb[9].mxu1 }
 0x2b3   :  { %v370_v22 = vadd.f32 %v525_v18, %v369_v21  ;;  %v599_v23 = vpop.f32.mrb[10].mxu1 }
 0x2b4   :  { %v381_v24 = vadd.f32 %v599_v23, %v525_v18  ;;  %v372_v25 = vpop.f32.mrb[11].mxu1  ;;  %v407_v26 = vsel %vm400_vm1, %v378_v20, -inf }
 0x2b5   :  { %v373_v27 = vadd.f32 %v525_v18, %v372_v25  ;;  %408 = vmax.xlane.f32.xlu1 %v407_v26  ;;  %v401_v28 = vsel %vm400_vm1, %v370_v22, -inf }
 0x2b6   :  { %402 = vmax.xlane.f32.xlu0 %v401_v28  ;;  %v410_v29 = vsel %vm400_vm1, %v381_v24, -inf }
 0x2b7   :  { %v404_v31 = vsel %vm400_vm1, %v373_v27, -inf }
 0x2b9   :  { %411 = vmax.xlane.f32.xlu1 %v410_v29  ;;  %v602_v30 = vpop.f32.mrb[12].mxu1 }
 0x2ba   :  { %v385_v32 = vpop.f32.mrb[13].mxu1  ;;  %405 = vmax.xlane.f32.xlu0 %v404_v31  ;;  %v394_v36 = vadd.f32 %v602_v30, %v525_v18 }
 0x2bb   :  { %v386_v33 = vadd.f32 %v525_v18, %v385_v32  ;;  %v603_v34 = vpop.f32.mrb[14].mxu1 }
 0x2bc   :  { %v388_v35 = vpop.f32.mrb[15].mxu1  ;;  %v397_v39 = vadd.f32 %v603_v34, %v525_v18  ;;  %v419_v41 = vsel %vm400_vm1, %v394_v36, -inf }
 0x2bd   :  { %v389_v37 = vadd.f32 %v525_v18, %v388_v35  ;;  %v413_v38 = vsel %vm400_vm1, %v386_v33, -inf }
 0x2be   :  { %414 = vmax.xlane.f32.xlu0 %v413_v38  ;;  %v422_v42 = vsel %vm400_vm1, %v397_v39, -inf }
 0x2bf   :  { %v416_v40 = vsel %vm400_vm1, %v389_v37, -inf }
 0x2c0   :  { %417 = vmax.xlane.f32.xlu1 %v416_v40 }
 0x2c2   :  { %420 = vmax.xlane.f32.xlu0 %v419_v41 }
 0x2c4   :  { %423 = vmax.xlane.f32.xlu1 %v422_v42 }
 0x342   :  { %v409_v43 = vpop.xlane.xlu1 %408 }
 0x343   :  { %v773_v44 = vsub.f32 %v378_v20, %v409_v43  ;;  %v403_v45 = vpop.xlane.xlu0 %402 }
 0x344   :  { %v775_v46 = vsub.f32 %v370_v22, %v403_v45 }
 0x345   :  { %v437_v47 = vmul.f32 1.442695, %v773_v44 }
 0x346   :  { %v433_v48 = vmul.f32 1.442695, %v775_v46  ;;  %v412_v49 = vpop.xlane.xlu1 %411 }
 0x347   :  { %616 = vpow2.f32 %v437_v47  ;;  %v779_v50 = vsub.f32 %v381_v24, %v412_v49  ;;  %v406_v51 = vpop.xlane.xlu0 %405 }
 0x348   :  { %v781_v52 = vsub.f32 %v373_v27, %v406_v51  ;;  %618 = vpow2.f32 %v433_v48 }
 0x349   :  { %v439_v53 = vmul.f32 1.442695, %v779_v50 }
 0x34a   :  { %v435_v54 = vmul.f32 1.442695, %v781_v52 }
 0x34b   :  { %620 = vpow2.f32 %v439_v53  ;;  %v415_v55 = vpop.xlane.xlu0 %414 }
 0x34c   :  { %v785_v56 = vsub.f32 %v386_v33, %v415_v55  ;;  %622 = vpow2.f32 %v435_v54 }
 0x34d   :  { %v418_v57 = vpop.xlane.xlu1 %417 }
 0x34e   :  { %v441_v58 = vmul.f32 1.442695, %v785_v56  ;;  %v788_v59 = vsub.f32 %v389_v37, %v418_v57 }
 0x34f   :  { %v421_v60 = vpop.xlane.xlu0 %420 }
 0x350   :  { %624 = vpow2.f32 %v441_v58  ;;  %v443_v61 = vmul.f32 1.442695, %v788_v59  ;;  %v791_v62 = vsub.f32 %v394_v36, %v421_v60 }
 0x351   :  { %v617_v63 = vpop.eup %616  ;;  %v424_v0 = vpop.xlane.xlu1 %423 }
 0x352   :  { %626 = vpow2.f32 %v443_v61  ;;  %v445_v1 = vmul.f32 1.442695, %v791_v62  ;;  %v794_v2 = vsub.f32 %v397_v39, %v424_v0  ;;  %v455_v3 = vsel %vm400_vm1, %v617_v63, 0.0  ;;  %v619_v4 = vpop.eup %618 }
 0x353   :  { %456 = vadd.xlane.f32.xlu0 %v455_v3  ;;  %v449_v8 = vsel %vm400_vm1, %v619_v4, 0.0 }
 0x354   :  { %628 = vpow2.f32 %v445_v1  ;;  %v447_v5 = vmul.f32 1.442695, %v794_v2 }
 0x355   :  { %v621_v6 = vpop.eup %620 }
 0x356   :  { %630 = vpow2.f32 %v447_v5  ;;  %v458_v7 = vsel %vm400_vm1, %v621_v6, 0.0  ;;  %v623_v9 = vpop.eup %622 }
 0x357   :  { %459 = vadd.xlane.f32.xlu1 %v458_v7  ;;  %450 = vadd.xlane.f32.xlu0 %v449_v8  ;;  %v452_v11 = vsel %vm400_vm1, %v623_v9, 0.0 }
 0x35a   :  { %v625_v10 = vpop.eup %624 }
 0x35b   :  { %453 = vadd.xlane.f32.xlu1 %v452_v11  ;;  %v461_v12 = vsel %vm400_vm1, %v625_v10, 0.0 }
 0x35c   :  { %v627_v13 = vpop.eup %626  ;;  %462 = vadd.xlane.f32.xlu0 %v461_v12 }
 0x35d   :  { %v464_v14 = vsel %vm400_vm1, %v627_v13, 0.0 }
 0x35e   :  { %v629_v15 = vpop.eup %628 }
 0x35f   :  { %465 = vadd.xlane.f32.xlu1 %v464_v14  ;;  %v467_v16 = vsel %vm400_vm1, %v629_v15, 0.0 }
 0x360   :  { %v631_v17 = vpop.eup %630  ;;  %468 = vadd.xlane.f32.xlu0 %v467_v16 }
 0x361   :  { %v470_v18 = vsel %vm400_vm1, %v631_v17, 0.0 }
 0x363   :  { %471 = vadd.xlane.f32.xlu1 %v470_v18 }
 0x3e0   :  { %v457_v19 = vpop.xlane.xlu0 %456 }
 0x3e1   :  { %632 = vlog2.f32 %v457_v19 }
 0x3e4   :  { %v460_v20 = vpop.xlane.xlu1 %459  ;;  %v451_v21 = vpop.xlane.xlu0 %450 }
 0x3e5   :  { %634 = vlog2.f32 %v460_v20 }
 0x3e6   :  { %636 = vlog2.f32 %v451_v21 }
 0x3e8   :  { %v454_v22 = vpop.xlane.xlu1 %453 }
 0x3e9   :  { %638 = vlog2.f32 %v454_v22  ;;  %v463_v23 = vpop.xlane.xlu0 %462 }
 0x3ea   :  { %640 = vlog2.f32 %v463_v23 }
 0x3eb   :  { %v633_v24 = vpop.eup %632 }
 0x3ec   :  { %v478_v25 = vmul.f32 0.6931472, %v633_v24  ;;  %v466_v26 = vpop.xlane.xlu1 %465 }
 0x3ed   :  { %642 = vlog2.f32 %v466_v26  ;;  %v469_v27 = vpop.xlane.xlu0 %468 }
 0x3ee   :  { %v491_v28 = vsub.f32 %v773_v44, %v478_v25  ;;  %644 = vlog2.f32 %v469_v27 }
 0x3ef   :  { %v635_v29 = vpop.eup %634 }
 0x3f0   :  { %v637_v30 = vpop.eup %636  ;;  %499 = vst.msk [vmem:[%s852_s7 + $0x10] sm:$0xff] %vm400_vm1, %v491_v28  ;;  %v480_v31 = vmul.f32 0.6931472, %v635_v29  ;;  %v472_v32 = vpop.xlane.xlu1 %471 }
 0x3f1   :  { %v474_v33 = vmul.f32 0.6931472, %v637_v30  ;;  %646 = vlog2.f32 %v472_v32 }
 0x3f2   :  { %v492_v34 = vsub.f32 %v779_v50, %v480_v31 }
 0x3f3   :  { %v639_v35 = vpop.eup %638  ;;  %v489_v36 = vsub.f32 %v775_v46, %v474_v33 }
 0x3f4   :  { %v641_v37 = vpop.eup %640  ;;  %500 = vst.msk [vmem:[%s852_s7 + $0x18] sm:$0xff] %vm400_vm1, %v492_v34  ;;  %v476_v38 = vmul.f32 0.6931472, %v639_v35 }
 0x3f5   :  { %497 = vst.msk [vmem:[%s852_s7] sm:$0xff] %vm400_vm1, %v489_v36  ;;  %v482_v39 = vmul.f32 0.6931472, %v641_v37 }
 0x3f6   :  { %v490_v40 = vsub.f32 %v781_v52, %v476_v38 }
 0x3f7   :  { %v643_v41 = vpop.eup %642  ;;  %v493_v42 = vsub.f32 %v785_v56, %v482_v39 }
 0x3f8   :  { %v645_v43 = vpop.eup %644  ;;  %498 = vst.msk [vmem:[%s852_s7 + $0x8] sm:$0xff] %vm400_vm1, %v490_v40  ;;  %v484_v44 = vmul.f32 0.6931472, %v643_v41 }
 0x3f9   :  { %501 = vst.msk [vmem:[%s852_s7 + $0x20] sm:$0xff] %vm400_vm1, %v493_v42  ;;  %v486_v45 = vmul.f32 0.6931472, %v645_v43 }
 0x3fa   :  { %v494_v46 = vsub.f32 %v788_v59, %v484_v44 }
 0x3fb   :  { %v647_v47 = vpop.eup %646  ;;  %v495_v48 = vsub.f32 %v791_v62, %v486_v45 }
 0x3fc   :  { %502 = vst.msk [vmem:[%s852_s7 + $0x28] sm:$0xff] %vm400_vm1, %v494_v46  ;;  %v488_v49 = vmul.f32 0.6931472, %v647_v47 }
 0x3fd   :  { %503 = vst.msk [vmem:[%s852_s7 + $0x30] sm:$0xff] %vm400_vm1, %v495_v48 }
 0x3fe   :  { %v496_v50 = vsub.f32 %v794_v2, %v488_v49 }
 0x400   :  { %504 = vst.msk [vmem:[%s852_s7 + $0x38] sm:$0xff] %vm400_vm1, %v496_v50 }

// kernel: tpu_custom_call.1
= control target key start
LH: loop header
LB: loop body
LE: loop exit
PB: predicated region body
PF: predicated region fallthrough
CT: control target
= control target key end

     0   :  { %vm210_vm0 = vcmask 261120   ;;  %vm400_vm1 = vcmask 64512   ;;  %s845_s1 = inlined_call_operand.vmem [shape: bf16[128,32], index: 1, kind: input, shape index: {}]   ;;  %s846_s0 = inlined_call_operand.vmem [shape: f32[64,128], index: 0, kind: input, shape index: {}]   ;;  %s847_s3 = inlined_call_operand.vmem [shape: bf16[32,32], index: 3, kind: input, shape index: {}]   ;;  %s848_s5 = inlined_call_operand.vmem [shape: bf16[32,8], index: 5, kind: input, shape index: {}]   ;;  %s849_s2 = inlined_call_operand.vmem [shape: f32[1,32], index: 2, kind: input, shape index: {}]   ;;  %s850_s4 = inlined_call_operand.vmem [shape: f32[1,32], index: 4, kind: input, shape index: {}]   ;;  %s851_s6 = inlined_call_operand.vmem [shape: f32[1,8], index: 6, kind: input, shape index: {}]   ;;  %s852_s7 = inlined_call_operand.vmem [shape: f32[64,8], index: 7, kind: output, shape index: {}]  }
   0x1   :  { %v604_v0 = vld [vmem:[%s845_s1] sm:$0xff]   ;;  %v605_v1 = vld [vmem:[%s845_s1 + $0x8] sm:$0xff]   ;;  %v606_v2 = vld [vmem:[%s845_s1 + $0x10] sm:$0xff]  }
   0x2   :  { %556 = vmatprep.subr.bf16.mxu0 %v604_v0  ;;  %v607_v3 = vld [vmem:[%s845_s1 + $0x18] sm:$0xff]   ;;  %v27_v4 = vld [vmem:[%s846_s0] sm:$0xff]  ;;  %v28_v5 = vld [vmem:[%s846_s0 + $0x8] sm:$0xff] }
   0x3   :  { %557 = vmatpush3.bf16.msra.mxu0 %v604_v0  ;;  %v35_v6 = vpack.c.bf16 %v28_v5, %v27_v4  ;;  %v608_v7 = vld [vmem:[%s845_s1 + $0x20] sm:$0xff]   ;;  %v609_v8 = vld [vmem:[%s845_s1 + $0x28] sm:$0xff]   ;;  %v610_v9 = vld [vmem:[%s845_s1 + $0x30] sm:$0xff]  }
   0x4   :  { %558 = vmatprep.subr.bf16.mxu0 %v605_v1  ;;  %v611_v10 = vld [vmem:[%s845_s1 + $0x38] sm:$0xff]   ;;  %v29_v11 = vld [vmem:[%s846_s0 + $0x10] sm:$0xff]  ;;  %v31_v13 = vld [vmem:[%s846_s0 + $0x20] sm:$0xff] }
   0x5   :  { %572 = vmatprep.mubr.bf16.mxu0 %v35_v6  ;;  %v30_v12 = vld [vmem:[%s846_s0 + $0x18] sm:$0xff]  ;;  %v32_v14 = vld [vmem:[%s846_s0 + $0x28] sm:$0xff]  ;;  %v33_v17 = vld [vmem:[%s846_s0 + $0x30] sm:$0xff] }
   0x6   :  { %v36_v15 = vpack.c.bf16 %v30_v12, %v29_v11  ;;  %v37_v16 = vpack.c.bf16 %v32_v14, %v31_v13  ;;  %v34_v18 = vld [vmem:[%s846_s0 + $0x38] sm:$0xff]  ;;  %v612_v20 = vld [vmem:[%s847_s3] sm:$0xff]   ;;  %v613_v21 = vld [vmem:[%s847_s3 + $0x8] sm:$0xff]  }
   0x7   :  { %559 = vmatpush3.bf16.msra.mxu0 %v605_v1  ;;  %v38_v19 = vpack.c.bf16 %v34_v18, %v33_v17  ;;  %580 = vmatprep.subr.bf16.mxu1 %v612_v20  ;;  %v614_v22 = vld [vmem:[%s848_s5] sm:$0xff]   ;;  %v615_v52 = vld [vmem:[%s848_s5 + $0x8] sm:$0xff]  }
   0x8   :  { %560 = vmatprep.subr.bf16.mxu0 %v606_v2  ;;  %581 = vmatpush3.bf16.msra.mxu1 %v612_v20  ;;  %v509_v23 = vld [vmem:[%s849_s2] ss:$0 sm:$0xff] }
   0x9   :  { %582 = vmatprep.subr.bf16.mxu1 %v613_v21  ;;  %v518_v53 = vld [vmem:[%s850_s4] ss:$0 sm:$0xff] }
   0xa   :  { %v525_v18 = vld [vmem:[%s851_s6] ss:$0 sm:$0xff] }
   0xb   :  { %561 = vmatpush3.bf16.msra.mxu0 %v606_v2 }
   0xc   :  { %562 = vmatprep.subr.bf16.mxu0 %v607_v3  ;;  %583 = vmatpush3.bf16.msra.mxu1 %v613_v21 }
   0xd   :  { %592 = vmatprep.subr.bf16.mxu1 %v614_v22 }
   0xf   :  { %563 = vmatpush3.bf16.msra.mxu0 %v607_v3 }
  0x10   :  { %564 = vmatprep.subr.bf16.mxu0 %v608_v7 }
  0x13   :  { %565 = vmatpush3.bf16.msra.mxu0 %v608_v7 }
  0x14   :  { %566 = vmatprep.subr.bf16.mxu0 %v609_v8 }
  0x17   :  { %567 = vmatpush3.bf16.msra.mxu0 %v609_v8 }
  0x18   :  { %568 = vmatprep.subr.bf16.mxu0 %v610_v9 }
  0x1b   :  { %569 = vmatpush3.bf16.msra.mxu0 %v610_v9 }
  0x1c   :  { %570 = vmatprep.subr.bf16.mxu0 %v611_v10 }
  0x1f   :  { %571 = vmatpush3.bf16.msra.mxu0 %v611_v10 }
  0x22   :  { %573 = vmatmul.mubr.bf16.vlgmr.msra.gmra.mrb[0].mxu0 %v36_v15 }
  0x23   :  { %576 = vmatprep.mubr.bf16.mxu0 %v37_v16 }
  0x2a   :  { %577 = vmatmul.mubr.bf16.gmra.mrb[4].mxu0 %v38_v19 }
  0xf5   :  { %v574_v24 = vpop.f32.mrb[0].mxu0 }
  0xf6   :  { %v153_v25 = vadd.f32 %v574_v24, %v509_v23  ;;  %v144_v26 = vpop.f32.mrb[1].mxu0 }
  0xf7   :  { %v145_v27 = vadd.f32 %v509_v23, %v144_v26  ;;  %v575_v28 = vpop.f32.mrb[2].mxu0 }
  0xf8   :  { %v156_v29 = vadd.f32 %v575_v28, %v509_v23  ;;  %v147_v30 = vpop.f32.mrb[3].mxu0  ;;  %v177_v32 = vmax.f32 %v153_v25, 0.0 }
  0xf9   :  { %v148_v31 = vadd.f32 %v509_v23, %v147_v30  ;;  %v175_v34 = vmax.f32 %v145_v27, 0.0 }
  0xfa   :  { %v178_v33 = vmax.f32 %v156_v29, 0.0 }
  0xfb   :  { %v176_v35 = vmax.f32 %v148_v31, 0.0 }
  0xfc   :  { %v184_v36 = vpack.c.bf16 %v178_v33, %v177_v32 }
  0xfd   :  { %v578_v37 = vpop.f32.mrb[4].mxu0  ;;  %v183_v38 = vpack.c.bf16 %v176_v35, %v175_v34 }
  0xfe   :  { %v169_v39 = vadd.f32 %v578_v37, %v509_v23  ;;  %v160_v40 = vpop.f32.mrb[5].mxu0 }
  0xff   :  { %v161_v41 = vadd.f32 %v509_v23, %v160_v40  ;;  %v579_v42 = vpop.f32.mrb[6].mxu0  ;;  %584 = vmatprep.mubr.msk.bf16.mxu1 %vm210_vm0, %v183_v38 }
 0x100   :  { %v181_v43 = vmax.f32 %v169_v39, 0.0  ;;  %v172_v44 = vadd.f32 %v579_v42, %v509_v23  ;;  %v163_v45 = vpop.f32.mrb[7].mxu0  ;;  %585 = vmatmul.mubr.msk.bf16.vlgmr.msra.gmra.mrb[0].mxu1 %vm210_vm0, %v184_v36 }
 0x101   :  { %v164_v46 = vadd.f32 %v509_v23, %v163_v45  ;;  %593 = vmatpush3.bf16.msra.mxu1 %v614_v22  ;;  %v179_v48 = vmax.f32 %v161_v41, 0.0 }
 0x102   :  { %v182_v47 = vmax.f32 %v172_v44, 0.0  ;;  %594 = vmatprep.subr.bf16.mxu1 %v615_v52 }
 0x103   :  { %v180_v49 = vmax.f32 %v164_v46, 0.0 }
 0x104   :  { %v186_v50 = vpack.c.bf16 %v182_v47, %v181_v43 }
 0x105   :  { %v185_v51 = vpack.c.bf16 %v180_v49, %v179_v48  ;;  %595 = vmatpush3.bf16.msra.mxu1 %v615_v52 }
 0x107   :  { %588 = vmatprep.mubr.msk.bf16.mxu1 %vm210_vm0, %v185_v51 }
 0x108   :  { %589 = vmatmul.mubr.msk.bf16.gmra.mrb[4].mxu1 %vm210_vm0, %v186_v50 }
 0x1d3   :  { %v586_v54 = vpop.f32.mrb[0].mxu1 }
 0x1d4   :  { %v266_v55 = vadd.f32 %v586_v54, %v518_v53  ;;  %v257_v56 = vpop.f32.mrb[1].mxu1 }
 0x1d5   :  { %v258_v57 = vadd.f32 %v518_v53, %v257_v56  ;;  %v587_v58 = vpop.f32.mrb[2].mxu1 }
 0x1d6   :  { %v269_v59 = vadd.f32 %v587_v58, %v518_v53  ;;  %v260_v60 = vpop.f32.mrb[3].mxu1  ;;  %v290_v62 = vmax.f32 %v266_v55, 0.0 }
 0x1d7   :  { %v261_v61 = vadd.f32 %v518_v53, %v260_v60  ;;  %v288_v0 = vmax.f32 %v258_v57, 0.0 }
 0x1d8   :  { %v291_v63 = vmax.f32 %v269_v59, 0.0 }
 0x1d9   :  { %v289_v1 = vmax.f32 %v261_v61, 0.0 }
 0x1da   :  { %v297_v2 = vpack.c.bf16 %v291_v63, %v290_v62 }
 0x1db   :  { %v296_v3 = vpack.c.bf16 %v289_v1, %v288_v0  ;;  %v590_v4 = vpop.f32.mrb[4].mxu1 }
 0x1dc   :  { %v282_v5 = vadd.f32 %v590_v4, %v518_v53  ;;  %v273_v6 = vpop.f32.mrb[5].mxu1 }
 0x1dd   :  { %v274_v7 = vadd.f32 %v518_v53, %v273_v6  ;;  %v591_v8 = vpop.f32.mrb[6].mxu1  ;;  %596 = vmatprep.mubr.msk.bf16.mxu1 %vm210_vm0, %v296_v3 }
 0x1de   :  { %v285_v9 = vadd.f32 %v591_v8, %v518_v53  ;;  %v276_v10 = vpop.f32.mrb[7].mxu1  ;;  %597 = vmatmul.mubr.msk.bf16.vlgmr.msra.gmra.mrb[8].mxu1 %vm210_vm0, %v297_v2  ;;  %v294_v12 = vmax.f32 %v282_v5, 0.0 }
 0x1df   :  { %v277_v11 = vadd.f32 %v518_v53, %v276_v10  ;;  %v292_v14 = vmax.f32 %v274_v7, 0.0 }
 0x1e0   :  { %v295_v13 = vmax.f32 %v285_v9, 0.0 }
 0x1e1   :  { %v293_v15 = vmax.f32 %v277_v11, 0.0 }
 0x1e2   :  { %v299_v16 = vpack.c.bf16 %v295_v13, %v294_v12 }
 0x1e3   :  { %v298_v17 = vpack.c.bf16 %v293_v15, %v292_v14 }
 0x1e5   :  { %600 = vmatprep.mubr.msk.bf16.mxu1 %vm210_vm0, %v298_v17 }
 0x1e6   :  { %601 = vmatmul.mubr.msk.bf16.gmra.mrb[12].mxu1 %vm210_vm0, %v299_v16 }
 0x2b1   :  { %v598_v19 = vpop.f32.mrb[8].mxu1 }
 0x2b2   :  { %v378_v20 = vadd.f32 %v598_v19, %v525_v18  ;;  %v369_v21 = vpop.f32.mrb[9].mxu1 }
 0x2b3   :  { %v370_v22 = vadd.f32 %v525_v18, %v369_v21  ;;  %v599_v23 = vpop.f32.mrb[10].mxu1 }
 0x2b4   :  { %v381_v24 = vadd.f32 %v599_v23, %v525_v18  ;;  %v372_v25 = vpop.f32.mrb[11].mxu1  ;;  %v407_v26 = vsel %vm400_vm1, %v378_v20, -inf }
 0x2b5   :  { %v373_v27 = vadd.f32 %v525_v18, %v372_v25  ;;  %408 = vmax.xlane.f32.xlu1 %v407_v26  ;;  %v401_v28 = vsel %vm400_vm1, %v370_v22, -inf }
 0x2b6   :  { %402 = vmax.xlane.f32.xlu0 %v401_v28  ;;  %v410_v29 = vsel %vm400_vm1, %v381_v24, -inf }
 0x2b7   :  { %v404_v31 = vsel %vm400_vm1, %v373_v27, -inf }
 0x2b9   :  { %411 = vmax.xlane.f32.xlu1 %v410_v29  ;;  %v602_v30 = vpop.f32.mrb[12].mxu1 }
 0x2ba   :  { %v385_v32 = vpop.f32.mrb[13].mxu1  ;;  %405 = vmax.xlane.f32.xlu0 %v404_v31  ;;  %v394_v36 = vadd.f32 %v602_v30, %v525_v18 }
 0x2bb   :  { %v386_v33 = vadd.f32 %v525_v18, %v385_v32  ;;  %v603_v34 = vpop.f32.mrb[14].mxu1 }
 0x2bc   :  { %v388_v35 = vpop.f32.mrb[15].mxu1  ;;  %v397_v39 = vadd.f32 %v603_v34, %v525_v18  ;;  %v419_v41 = vsel %vm400_vm1, %v394_v36, -inf }
 0x2bd   :  { %v389_v37 = vadd.f32 %v525_v18, %v388_v35  ;;  %v413_v38 = vsel %vm400_vm1, %v386_v33, -inf }
 0x2be   :  { %414 = vmax.xlane.f32.xlu0 %v413_v38  ;;  %v422_v42 = vsel %vm400_vm1, %v397_v39, -inf }
 0x2bf   :  { %v416_v40 = vsel %vm400_vm1, %v389_v37, -inf }
 0x2c0   :  { %417 = vmax.xlane.f32.xlu1 %v416_v40 }
 0x2c2   :  { %420 = vmax.xlane.f32.xlu0 %v419_v41 }
 0x2c4   :  { %423 = vmax.xlane.f32.xlu1 %v422_v42 }
 0x342   :  { %v409_v43 = vpop.xlane.xlu1 %408 }
 0x343   :  { %v773_v44 = vsub.f32 %v378_v20, %v409_v43  ;;  %v403_v45 = vpop.xlane.xlu0 %402 }
 0x344   :  { %v775_v46 = vsub.f32 %v370_v22, %v403_v45 }
 0x345   :  { %v437_v47 = vmul.f32 1.442695, %v773_v44 }
 0x346   :  { %v433_v48 = vmul.f32 1.442695, %v775_v46  ;;  %v412_v49 = vpop.xlane.xlu1 %411 }
 0x347   :  { %616 = vpow2.f32 %v437_v47  ;;  %v779_v50 = vsub.f32 %v381_v24, %v412_v49  ;;  %v406_v51 = vpop.xlane.xlu0 %405 }
 0x348   :  { %v781_v52 = vsub.f32 %v373_v27, %v406_v51  ;;  %618 = vpow2.f32 %v433_v48 }
 0x349   :  { %v439_v53 = vmul.f32 1.442695, %v779_v50 }
 0x34a   :  { %v435_v54 = vmul.f32 1.442695, %v781_v52 }
 0x34b   :  { %620 = vpow2.f32 %v439_v53  ;;  %v415_v55 = vpop.xlane.xlu0 %414 }
 0x34c   :  { %v785_v56 = vsub.f32 %v386_v33, %v415_v55  ;;  %622 = vpow2.f32 %v435_v54 }
 0x34d   :  { %v418_v57 = vpop.xlane.xlu1 %417 }
 0x34e   :  { %v441_v58 = vmul.f32 1.442695, %v785_v56  ;;  %v788_v59 = vsub.f32 %v389_v37, %v418_v57 }
 0x34f   :  { %v421_v60 = vpop.xlane.xlu0 %420 }
 0x350   :  { %624 = vpow2.f32 %v441_v58  ;;  %v443_v61 = vmul.f32 1.442695, %v788_v59  ;;  %v791_v62 = vsub.f32 %v394_v36, %v421_v60 }
 0x351   :  { %v617_v63 = vpop.eup %616  ;;  %v424_v0 = vpop.xlane.xlu1 %423 }
 0x352   :  { %626 = vpow2.f32 %v443_v61  ;;  %v445_v1 = vmul.f32 1.442695, %v791_v62  ;;  %v794_v2 = vsub.f32 %v397_v39, %v424_v0  ;;  %v455_v3 = vsel %vm400_vm1, %v617_v63, 0.0  ;;  %v619_v4 = vpop.eup %618 }
 0x353   :  { %456 = vadd.xlane.f32.xlu0 %v455_v3  ;;  %v449_v8 = vsel %vm400_vm1, %v619_v4, 0.0 }
 0x354   :  { %628 = vpow2.f32 %v445_v1  ;;  %v447_v5 = vmul.f32 1.442695, %v794_v2 }
 0x355   :  { %v621_v6 = vpop.eup %620 }
 0x356   :  { %630 = vpow2.f32 %v447_v5  ;;  %v458_v7 = vsel %vm400_vm1, %v621_v6, 0.0  ;;  %v623_v9 = vpop.eup %622 }
 0x357   :  { %459 = vadd.xlane.f32.xlu1 %v458_v7  ;;  %450 = vadd.xlane.f32.xlu0 %v449_v8  ;;  %v452_v11 = vsel %vm400_vm1, %v623_v9, 0.0 }
 0x35a   :  { %v625_v10 = vpop.eup %624 }
 0x35b   :  { %453 = vadd.xlane.f32.xlu1 %v452_v11  ;;  %v461_v12 = vsel %vm400_vm1, %v625_v10, 0.0 }
 0x35c   :  { %v627_v13 = vpop.eup %626  ;;  %462 = vadd.xlane.f32.xlu0 %v461_v12 }
 0x35d   :  { %v464_v14 = vsel %vm400_vm1, %v627_v13, 0.0 }
 0x35e   :  { %v629_v15 = vpop.eup %628 }
 0x35f   :  { %465 = vadd.xlane.f32.xlu1 %v464_v14  ;;  %v467_v16 = vsel %vm400_vm1, %v629_v15, 0.0 }
 0x360   :  { %v631_v17 = vpop.eup %630  ;;  %468 = vadd.xlane.f32.xlu0 %v467_v16 }
 0x361   :  { %v470_v18 = vsel %vm400_vm1, %v631_v17, 0.0 }
 0x363   :  { %471 = vadd.xlane.f32.xlu1 %v470_v18 }
 0x3e0   :  { %v457_v19 = vpop.xlane.xlu0 %456 }
 0x3e1   :  { %632 = vlog2.f32 %v457_v19 }
 0x3e4   :  { %v460_v20 = vpop.xlane.xlu1 %459  ;;  %v451_v21 = vpop.xlane.xlu0 %450 }
 0x3e5   :  { %634 = vlog2.f32 %v460_v20 }
 0x3e6   :  { %636 = vlog2.f32 %v451_v21 }
 0x3e8   :  { %v454_v22 = vpop.xlane.xlu1 %453 }
 0x3e9   :  { %638 = vlog2.f32 %v454_v22  ;;  %v463_v23 = vpop.xlane.xlu0 %462 }
 0x3ea   :  { %640 = vlog2.f32 %v463_v23 }
 0x3eb   :  { %v633_v24 = vpop.eup %632 }
 0x3ec   :  { %v478_v25 = vmul.f32 0.6931472, %v633_v24  ;;  %v466_v26 = vpop.xlane.xlu1 %465 }
 0x3ed   :  { %642 = vlog2.f32 %v466_v26  ;;  %v469_v27 = vpop.xlane.xlu0 %468 }
 0x3ee   :  { %v491_v28 = vsub.f32 %v773_v44, %v478_v25  ;;  %644 = vlog2.f32 %v469_v27 }
 0x3ef   :  { %v635_v29 = vpop.eup %634 }
 0x3f0   :  { %v637_v30 = vpop.eup %636  ;;  %499 = vst.msk [vmem:[%s852_s7 + $0x10] sm:$0xff] %vm400_vm1, %v491_v28  ;;  %v480_v31 = vmul.f32 0.6931472, %v635_v29  ;;  %v472_v32 = vpop.xlane.xlu1 %471 }
 0x3f1   :  { %v474_v33 = vmul.f32 0.6931472, %v637_v30  ;;  %646 = vlog2.f32 %v472_v32 }
 0x3f2   :  { %v492_v34 = vsub.f32 %v779_v50, %v480_v31 }
 0x3f3   :  { %v639_v35 = vpop.eup %638  ;;  %v489_v36 = vsub.f32 %v775_v46, %v474_v33 }
 0x3f4   :  { %v641_v37 = vpop.eup %640  ;;  %500 = vst.msk [vmem:[%s852_s7 + $0x18] sm:$0xff] %vm400_vm1, %v492_v34  ;;  %v476_v38 = vmul.f32 0.6931472, %v639_v35 }
 0x3f5   :  { %497 = vst.msk [vmem:[%s852_s7] sm:$0xff] %vm400_vm1, %v489_v36  ;;  %v482_v39 = vmul.f32 0.6931472, %v641_v37 }
 0x3f6   :  { %v490_v40 = vsub.f32 %v781_v52, %v476_v38 }
 0x3f7   :  { %v643_v41 = vpop.eup %642  ;;  %v493_v42 = vsub.f32 %v785_v56, %v482_v39 }
 0x3f8   :  { %v645_v43 = vpop.eup %644  ;;  %498 = vst.msk [vmem:[%s852_s7 + $0x8] sm:$0xff] %vm400_vm1, %v490_v40  ;;  %v484_v44 = vmul.f32 0.6931472, %v643_v41 }
 0x3f9   :  { %501 = vst.msk [vmem:[%s852_s7 + $0x20] sm:$0xff] %vm400_vm1, %v493_v42  ;;  %v486_v45 = vmul.f32 0.6931472, %v645_v43 }
 0x3fa   :  { %v494_v46 = vsub.f32 %v788_v59, %v484_v44 }
 0x3fb   :  { %v647_v47 = vpop.eup %646  ;;  %v495_v48 = vsub.f32 %v791_v62, %v486_v45 }
 0x3fc   :  { %502 = vst.msk [vmem:[%s852_s7 + $0x28] sm:$0xff] %vm400_vm1, %v494_v46  ;;  %v488_v49 = vmul.f32 0.6931472, %v647_v47 }
 0x3fd   :  { %503 = vst.msk [vmem:[%s852_s7 + $0x30] sm:$0xff] %vm400_vm1, %v495_v48 }
 0x3fe   :  { %v496_v50 = vsub.f32 %v794_v2, %v488_v49 }
 0x400   :  { %504 = vst.msk [vmem:[%s852_s7 + $0x38] sm:$0xff] %vm400_vm1, %v496_v50 }

</bundles_post_ra>
